<compile_context>
chip_gen: v7x
topology: tpu7x:2x2x1
jax: 0.10.0
libtpu: 0.0.40
codegen_flags: <defaults>
</compile_context>

<pallas_src>
import math
import jax
import jax.numpy as jnp
from jax.experimental import pallas as pl
from jax.experimental.pallas import tpu as pltpu


def _cls_token_kernel(x_ref, w_ref, o_ref):
    # x_ref: VMEM (TB, T*D)      -- input token rows, trailing (T, D) flattened (lane-dense)
    # w_ref: VMEM (1, D)         -- [CLS] token weight, resident across all grid steps
    # o_ref: VMEM (TB, (T+1)*D)  -- output rows: [ tokens | cls ]
    tb = o_ref.shape[0]
    td = x_ref.shape[1]          # T * D
    d = w_ref.shape[1]           # D
    # Bulk copy of the existing tokens.
    o_ref[:, :td] = x_ref[...]
    # Append the [CLS] token to every row of this batch tile: one broadcast + store.
    o_ref[:, td:] = jnp.broadcast_to(w_ref[...], (tb, d))


def cls_token_forward(x, weight):
    """x: [B, T, D]; weight: [D]. Returns concat([x, cls], axis=1) -> [B, T+1, D]."""
    B, T, D = x.shape
    assert weight.shape == (D,)
    # torch.cat requires matching dtypes; the appended [CLS] row follows x's dtype.
    w2 = weight.reshape(1, D).astype(x.dtype)
    itemsize = jnp.dtype(x.dtype).itemsize

    # Dtype-aware sublane multiple: 8 (f32), 16 (bf16/f16), 32 (int8/fp8).
    sub = max(8, 32 // itemsize)

    # Bytes of one batch row across the (input + output) tiles.
    row_bytes = (T * D + (T + 1) * D) * itemsize

    # Generation-aware VMEM budget for the double-buffered working set.
    try:
        vmem_cap = int(pltpu.get_tpu_info().vmem_capacity_bytes)
    except Exception:  # interpret mode / unexpected runtimes
        vmem_cap = 64 * 1024 * 1024
    if vmem_cap >= 96 * 1024 * 1024:      # v5e / v6e class (128 MiB physical VMEM)
        ws_budget = 64 * 1024 * 1024
    else:                                  # v7x class (64 MiB physical per TensorCore)
        ws_budget = 44 * 1024 * 1024

    # Rows per tile such that 2 x (in tile + out tile) fits inside the budget.
    vmem_rows = max(1, ws_budget // (2 * row_bytes))

    tb = min(B, vmem_rows)
    # Guarantee >= 2 grid steps when the batch allows it, so v7x's two TensorCores
    # both get work under dimension_semantics=("parallel",).
    if B >= 2 * sub:
        tb = min(tb, pl.cdiv(B, 2))
    if tb < B:
        tb = max(sub, (tb // sub) * sub)   # sublane-aligned batch tile
        if tb >= B:                        # rounding made it cover the whole batch
            tb = B
    TB = int(tb)

    grid = (pl.cdiv(B, TB),)

    # Scoped VMEM: 2x double-buffered (in + out) tiles + resident weight + headroom,
    # clamped below physical capacity so the compiler keeps full double-buffering.
    vmem_limit = 2 * TB * row_bytes + D * itemsize + (2 << 20)
    vmem_limit = int(min(vmem_limit, max(vmem_cap - (8 << 20), 16 << 20)))

    x2 = x.reshape(B, T * D)               # lane-dense input rows (free reshape)

    bytes_accessed = (B * T * D + D + B * (T + 1) * D) * itemsize

    out2 = pl.pallas_call(
        _cls_token_kernel,
        out_shape=jax.ShapeDtypeStruct((B, (T + 1) * D), x.dtype),
        grid=grid,
        in_specs=[
            pl.BlockSpec((TB, T * D), lambda i: (i, 0)),
            pl.BlockSpec((1, D), lambda i: (0, 0)),
        ],
        out_specs=pl.BlockSpec((TB, (T + 1) * D), lambda i: (i, 0)),
        compiler_params=pltpu.CompilerParams(
            dimension_semantics=("parallel",),
            vmem_limit_bytes=vmem_limit),
        cost_estimate=pl.CostEstimate(
            flops=0, transcendentals=0, bytes_accessed=bytes_accessed),
    )(x2, w2)

    return out2.reshape(B, T + 1, D)


if __name__ == "__main__":
    # Module hyperparameters (small, consistent with CLSToken.__init__ / forward)
    d_token = 32        # D
    n_tokens = 8        # T (tokens already present before appending [CLS])
    batch = 2           # B
    d_sqrt_inv = 1.0 / math.sqrt(d_token)

    key = jax.random.PRNGKey(0)
    k_w, k_x = jax.random.split(key)

    # _TokenInitialization.UNIFORM: U(-1/sqrt(d), 1/sqrt(d))
    weight = jax.random.uniform(
        k_w, (d_token,), minval=-d_sqrt_inv, maxval=d_sqrt_inv, dtype=jnp.float32)
    x = jax.random.normal(k_x, (batch, n_tokens, d_token), dtype=jnp.float32)

    out = cls_token_forward(x, weight)
    out = jax.block_until_ready(out)

    # Pure-JAX reference: torch.cat([x, weight.expand(B, 1, D)], dim=1)
    ref = jnp.concatenate(
        [x, jnp.broadcast_to(weight[None, None, :], (batch, 1, d_token))], axis=1)
    assert out.shape == (batch, n_tokens + 1, d_token)
    assert jnp.allclose(out, ref), "mismatch vs reference"

    print("KERNEL_OK")
</pallas_src>

<mosaic_0001>
module attributes {stable_mosaic.version = 11 : i64} {
  func.func @_cls_token_kernel(%arg0: i32, %arg1: memref<2x256xf32, #tpu.memory_space<vmem>>, %arg2: memref<1x32xf32, #tpu.memory_space<vmem>>, %arg3: memref<2x288xf32, #tpu.memory_space<vmem>>) attributes {dimension_semantics = [#tpu.dimension_semantics<parallel>], iteration_bounds = array<i64: 1>, scalar_prefetch = 0 : i64, scratch_operands = 0 : i64, tpu.core_type = #tpu.core_type<tc>, window_params = [{transform_indices = @transform_0, window_bounds = array<i64: 2, 256>}, {pipeline_mode = #tpu.pipeline_mode<synchronous>, transform_indices = @transform_1, window_bounds = array<i64: 1, 32>}, {transform_indices = @transform_2, window_bounds = array<i64: 2, 288>}]} {
    %c0 = arith.constant 0 : index
    %c0_0 = arith.constant 0 : index
    %0 = vector.load %arg1[%c0, %c0_0] : memref<2x256xf32, #tpu.memory_space<vmem>>, vector<2x256xf32>
    %c0_1 = arith.constant 0 : index
    %c0_2 = arith.constant 0 : index
    %1 = vector.load %arg3[%c0_1, %c0_2] : memref<2x288xf32, #tpu.memory_space<vmem>>, vector<2x256xf32>
    tpu.vector_store %arg3[%c0_1, %c0_2], %0 {strides = array<i32>} : memref<2x288xf32, #tpu.memory_space<vmem>>, vector<2x256xf32>,
    %c0_3 = arith.constant 0 : index
    %c0_4 = arith.constant 0 : index
    %2 = vector.load %arg2[%c0_3, %c0_4] : memref<1x32xf32, #tpu.memory_space<vmem>>, vector<1x32xf32>
    %3 = vector.shape_cast %2 : vector<1x32xf32> to vector<1x32xf32>
    %4 = vector.broadcast %3 : vector<1x32xf32> to vector<2x32xf32>
    %c0_5 = arith.constant 0 : index
    %c256 = arith.constant 256 : index
    %5 = vector.load %arg3[%c0_5, %c256] : memref<2x288xf32, #tpu.memory_space<vmem>>, vector<2x32xf32>
    tpu.vector_store %arg3[%c0_5, %c256], %4 {strides = array<i32>} : memref<2x288xf32, #tpu.memory_space<vmem>>, vector<2x32xf32>,
    return
  }
  func.func @transform_0(%arg0: i32) -> (i32, i32) {
    %c0_i32 = arith.constant 0 : i32
    %c0_i32_0 = arith.constant 0 : i32
    return %arg0, %c0_i32 : i32, i32
  }
  func.func @transform_1(%arg0: i32) -> (i32, i32) {
    %c0_i32 = arith.constant 0 : i32
    %c0_i32_0 = arith.constant 0 : i32
    %c0_i32_1 = arith.constant 0 : i32
    return %c0_i32, %c0_i32_0 : i32, i32
  }
  func.func @transform_2(%arg0: i32) -> (i32, i32) {
    %c0_i32 = arith.constant 0 : i32
    %c0_i32_0 = arith.constant 0 : i32
    return %arg0, %c0_i32 : i32, i32
  }
}

</mosaic_0001>

<bundles_post_ra>
// kernel: tpu_custom_call.1
= control target key start
LH: loop header
LB: loop body
LE: loop exit
PB: predicated region body
PF: predicated region fallthrough
CT: control target
= control target key end

     0   :  { %7 = vsyncpa [#allocation3], 0  ;;  %s145_s0 = inlined_call_operand.hbm [shape: f32[2,256], index: 0, kind: input, shape index: {}]   ;;  %s146_s1 = inlined_call_operand.vmem [shape: f32[1,32], index: 1, kind: input, shape index: {}]   ;;  %s147_s2 = inlined_call_operand.hbm [shape: f32[2,288], index: 2, kind: output, shape index: {}]  }
   0x1   :  { %8 = vsyncpa [#allocation4], 0  ;;  %s101_s9 = smov [#allocation2]   ;;  %s53_s13 = scalar_lea.hbm %s145_s0, 64 }
   0x2   :  { %s15_s10 = sshll.u32 %s101_s9, 4  ;;  %p54_p0 = scmp.ne.s32.totalorder %s145_s0, %s53_s13  ;;  %s16_s10 = int_to_ptr.vmem [resolvable:$true] %s15_s10 }
   0x3   :  { %p57_p1 = scmp.lt.u32.totalorder %s53_s13, %s145_s0 }
   0x5   :  { %p59_p2 = pnand %p57_p1, %p54_p0 }
   0x7   :  { %62 = shalt.err (!%p59_p2)
}
   0x8   :  { %s63_s18 = scalar_lea.vmem %s16_s10, 64  ;;  %p68_p4 = scmp.lt.s32.totalorder %s16_s10, %s16_s10 }
   0x9   :  { %p64_p3 = scmp.ne.s32.totalorder %s16_s10, %s63_s18  ;;  %p69_p5 = scmp.lt.s32.totalorder %s63_s18, %s63_s18 }
   0xb   :  { %p70_p6 = por %p69_p5, %p68_p4 }
   0xd   :  { %p71_p7 = pnand %p70_p6, %p64_p3 }
   0xf   :  { %74 = shalt.err (!%p71_p7)
}
  0x10   :  { %18 = dma.hbm_to_vmem [thread:$0]  %s145_s0, 64, %s16_s10, [#allocation3]  }
  0x11   :  { %97 = dma.done.wait [#allocation3], 64  }
  0x12   :  { %98 = vsyncadd [#allocation3], 4294967232  ;;  %s102_s21 = smov [#allocation5]   ;;  %vm33_vm0 = vcmask 254976   ;;  %v24_v0 = vld [vmem:[#allocation2] sm:$0xf] }
  0x13   :  { %s41_s22 = sshll.u32 %s102_s21, 4  ;;  %v50_v1 = vld [vmem:[%s146_s1] ss:$0 sm:$0xff]  ;;  %25 = vst [vmem:[#allocation5] sm:$0xf] %v24_v0  ;;  %s42_s22 = int_to_ptr.vmem [resolvable:$true] %s41_s22 }
  0x14   :  { %34 = vst.msk [vmem:[#allocation5 + $0x4] sm:$0x3] %vm33_vm0, %v50_v1  ;;  %s75_s25 = scalar_lea.vmem %s42_s22, 96  ;;  %p80_p9 = scmp.lt.s32.totalorder %s42_s22, %s42_s22 }
  0x15   :  { %p76_p8 = scmp.ne.s32.totalorder %s42_s22, %s75_s25  ;;  %p81_p10 = scmp.lt.s32.totalorder %s75_s25, %s75_s25 }
  0x17   :  { %p82_p11 = por %p81_p10, %p80_p9 }
  0x19   :  { %p83_p12 = pnand %p82_p11, %p76_p8 }
  0x1b   :  { %86 = shalt.err (!%p83_p12)
}
  0x1c   :  { %s87_s27 = scalar_lea.hbm %s147_s2, 96 }
  0x1d   :  { %p88_p13 = scmp.ne.s32.totalorder %s147_s2, %s87_s27  ;;  %p91_p0 = scmp.lt.u32.totalorder %s87_s27, %s147_s2 }
  0x1f   :  { %p93_p1 = pnand %p91_p0, %p88_p13 }
  0x21   :  { %96 = shalt.err (!%p93_p1)
}
  0x22   :  { %44 = dma.vmem_to_hbm [thread:$0]  %s42_s22, 96, %s147_s2, [#allocation4]  }
  0x23   :  { %99 = dma.done.wait [#allocation4], 96  }
  0x24   :  { %100 = vsyncadd [#allocation4], 4294967200 }
  0x25   :  { %48 = vsyncpa [#allocation3], 1 }
  0x26   :  { %49 = vsyncpa [#allocation4], 1 }

</bundles_post_ra>
